<compile_context>
chip_gen: v5e
topology: v5e:2x2
jax: 0.10.0
libtpu: 0.0.40
codegen_flags: <defaults>
</compile_context>

<pallas_src>
from functools import partial

import jax
import jax.numpy as jnp
from jax import lax
from jax.experimental import pallas as pl
from jax.experimental.pallas import tpu as pltpu


def critic_kernel(x_ref, a_ref, w1x_ref, w1a_ref, b1_ref, w2_ref, b2_ref,
                  w3_ref, b3_ref, wq_ref, bq_ref, q_ref):
    cd = w2_ref.dtype  # compute dtype (bf16) — inputs arrive f32 and are cast here.

    x = x_ref[...].astype(cd)
    a = a_ref[...].astype(cd)

    # fc1 with concat/scale folded into the weights: h = x @ W1_x + a @ W1_a + b1 (f32 acc).
    h = (jnp.dot(x, w1x_ref[...], preferred_element_type=jnp.float32)
         + jnp.dot(a, w1a_ref[...], preferred_element_type=jnp.float32)
         + b1_ref[...])
    h = jnp.maximum(h, 0.0).astype(cd)

    h = jnp.dot(h, w2_ref[...], preferred_element_type=jnp.float32) + b2_ref[...]
    h = jnp.maximum(h, 0.0).astype(cd)

    h = jnp.dot(h, w3_ref[...], preferred_element_type=jnp.float32) + b3_ref[...]
    h = jnp.maximum(h, 0.0).astype(cd)

    # q_out head: contract (1, H) with (tb, H) on the hidden dim -> (1, tb), lane-dense output.
    q = lax.dot_general(wq_ref[...], h,
                        dimension_numbers=(((1,), (1,)), ((), ())),
                        preferred_element_type=jnp.float32)
    q_ref[...] = q + bq_ref[0]                    # bq read from SMEM (scalar path)


def prepare_params(params, obs_dim, goal_dim, max_action,
                   compute_dtype=jnp.bfloat16):
    """One-time repack (outside the hot path) of torch-style parameters.

    Weights are stored (in_features, out_features), i.e. transposed vs torch.nn.Linear,
    so the kernel computes y = x @ W + b.
    """
    w1, b1, w2, b2, w3, b3, wq, bq = params
    xg = obs_dim + goal_dim
    w1_x = w1[:xg]                        # rows for x = [obs, goal]
    w1_goal = w1[xg:xg + goal_dim]        # rows for the duplicated goal
    w1_a = w1[xg + goal_dim:]             # rows for actions
    # Fold duplicated goal features into the goal rows of W1_x, and 1/max_action into W1_a.
    w1_x = w1_x.at[obs_dim:xg].add(w1_goal)
    ma = jnp.asarray(max_action, jnp.float32)
    if ma.ndim == 0:
        w1_a = w1_a / ma
    else:                                  # per-action-dim max_action vector
        w1_a = w1_a / ma.reshape(-1, 1)
    cd = compute_dtype
    return (w1_x.astype(cd), w1_a.astype(cd),
            jnp.asarray(b1, jnp.float32).reshape(1, -1),
            w2.astype(cd), jnp.asarray(b2, jnp.float32).reshape(1, -1),
            w3.astype(cd), jnp.asarray(b3, jnp.float32).reshape(1, -1),
            wq.T.astype(cd),                                   # (1, hidden) head row
            jnp.asarray(bq, jnp.float32).reshape(-1))          # (1,) SMEM scalar


def _select_batch_tile(batch):
    """Generation-aware batch tile. Big enough to amortize the ~0.35us grid-step overhead and
    the W2/W3 weight streaming, capped so v7x still gets >=2 grid steps for its two TCs."""
    try:
        kind = jax.devices()[0].device_kind.lower()
    except Exception:  # pragma: no cover
        kind = ""
    old_gen = any(v in kind for v in ("v2", "v3", "v4", "v5"))
    max_tb = 512 if old_gen else 2048
    if batch <= max_tb:
        if batch >= 512:
            # Split into >=2 tiles (dual-TC sharding on v7x); round to a multiple of 128 so
            # non-final blocks satisfy (8,128) and the (1, tb) output block stays lane-dense.
            half = pl.cdiv(batch, 2)
            tb = ((half + 127) // 128) * 128
            return min(tb, max_tb)
        return batch                       # single full-extent tile: no padding at all
    # batch > max_tb: pick the candidate tile minimizing ragged padding (prefer larger tiles).
    cands = [t for t in (256, 512, 1024, 2048) if t <= max_tb]
    return min(cands, key=lambda t: (pl.cdiv(batch, t) * t - batch, -t))


@partial(jax.jit, static_argnames=("tb",))
def _critic_forward_impl(x, actions, prepared, *, tb):
    w1x, w1a, b1, w2, b2, w3, b3, wq, bq = prepared
    B = x.shape[0]
    xg_dim = x.shape[1]
    act_dim = actions.shape[1]
    hidden = w2.shape[0]

    n_tiles = pl.cdiv(B, tb)
    b_pad = n_tiles * tb
    if b_pad != B:
        # Ragged last tile: pad (f32, no cast pass). Divisible / single-tile cases skip this.
        x = jnp.pad(x, ((0, b_pad - B), (0, 0)))
        actions = jnp.pad(actions, ((0, b_pad - B), (0, 0)))

    flops = 2 * b_pad * hidden * (xg_dim + act_dim + 2 * hidden + 1)
    bytes_accessed = (
        b_pad * (xg_dim + act_dim) * 4 + b_pad * 4                      # activations in/out
        + 2 * (w1x.size + w1a.size + w2.size + w3.size + wq.size)       # bf16 weights
        + 4 * (b1.size + b2.size + b3.size + bq.size))                  # f32 biases

    # Weights: constant block index across the grid -> stay resident in VMEM.
    def resident(shape):
        return pl.BlockSpec(shape, lambda i: (0, 0))

    out = pl.pallas_call(
        critic_kernel,
        out_shape=jax.ShapeDtypeStruct((1, b_pad), jnp.float32),
        grid_spec=pltpu.PrefetchScalarGridSpec(
            num_scalar_prefetch=0,
            grid=(n_tiles,),
            in_specs=[
                pl.BlockSpec((tb, xg_dim), lambda i: (i, 0)),    # x tile (f32, cast in-kernel)
                pl.BlockSpec((tb, act_dim), lambda i: (i, 0)),   # actions tile
                resident((xg_dim, hidden)),                      # W1_x
                resident((act_dim, hidden)),                     # W1_a
                resident((1, hidden)),                           # b1
                resident((hidden, hidden)),                      # W2
                resident((1, hidden)),                           # b2
                resident((hidden, hidden)),                      # W3
                resident((1, hidden)),                           # b3
                resident((1, hidden)),                           # wq row
                pl.BlockSpec(memory_space=pltpu.MemorySpace.SMEM),  # bq (1,) scalar
            ],
            out_specs=pl.BlockSpec((1, tb), lambda i: (0, i)),   # lane-dense (1, tb) blocks
        ),
        compiler_params=pltpu.CompilerParams(
            dimension_semantics=("parallel",)),
        cost_estimate=pl.CostEstimate(flops=int(flops), transcendentals=0,
                                      bytes_accessed=int(bytes_accessed)),
    )(x, actions, w1x, w1a, b1, w2, b2, w3, b3, wq, bq)

    # (1, b_pad) -> (b_pad, 1); drop padded rows.
    return out.reshape(b_pad, 1)[:B]


def critic_forward(x, actions, prepared):
    tb = _select_batch_tile(x.shape[0])
    return _critic_forward_impl(x, actions, prepared, tb=tb)


def init_params(key, in_dim, hidden=256):
    # Deterministic init mimicking torch.nn.Linear default: U(-1/sqrt(fan_in), 1/sqrt(fan_in)).
    def linear(k, fan_in, fan_out):
        kw, kb = jax.random.split(k)
        bound = 1.0 / jnp.sqrt(jnp.float32(fan_in))
        w = jax.random.uniform(kw, (fan_in, fan_out), jnp.float32, -bound, bound)
        b = jax.random.uniform(kb, (1, fan_out), jnp.float32, -bound, bound)
        return w, b

    k1, k2, k3, k4 = jax.random.split(key, 4)
    w1, b1 = linear(k1, in_dim, hidden)
    w2, b2 = linear(k2, hidden, hidden)
    w3, b3 = linear(k3, hidden, hidden)
    wq, bq = linear(k4, hidden, 1)
    return (w1, b1, w2, b2, w3, b3, wq, bq)


def reference_forward(x, actions, params, goal_dim, max_action):
    # Pure-JAX f32 reference matching the PyTorch module.
    goal = x[..., -goal_dim:]
    h = jnp.concatenate([x, goal, actions / max_action], axis=1)
    w1, b1, w2, b2, w3, b3, wq, bq = params
    h = jnp.maximum(h @ w1 + b1, 0.0)
    h = jnp.maximum(h @ w2 + b2, 0.0)
    h = jnp.maximum(h @ w3 + b3, 0.0)
    return h @ wq + bq


if __name__ == "__main__":
    # env_params consistent with the module: obs=10, goal=3, action=4, action_max=1.0
    obs_dim, goal_dim, act_dim = 10, 3, 4
    max_action = 1.0
    in_dim = obs_dim + 2 * goal_dim + act_dim  # fc1 input dim = obs + 2*goal + action

    key = jax.random.PRNGKey(0)
    kx, ka, kp = jax.random.split(key, 3)

    params = init_params(kp, in_dim)
    prepared = prepare_params(params, obs_dim, goal_dim, max_action)

    # batch=2: small single-tile case.  batch=600: multi-tile grid (>=2 steps, resident
    # weights across steps) with a ragged last tile (exercises the pad path).
    for batch in (2, 600):
        kxb, kab = jax.random.split(jax.random.fold_in(kx, batch))
        # x is (obs concatenated with goal), as in HER: shape (B, obs + goal)
        x = jax.random.normal(kxb, (batch, obs_dim + goal_dim), jnp.float32)
        actions = jax.random.uniform(kab, (batch, act_dim), jnp.float32,
                                     -max_action, max_action)

        q = jax.block_until_ready(critic_forward(x, actions, prepared))
        q_ref = reference_forward(x, actions, params, goal_dim, max_action)

        assert q.shape == (batch, 1)
        # bf16 weights/activations with f32 accumulation -> loose tolerance vs f32 reference.
        assert jnp.allclose(q, q_ref, atol=1e-1, rtol=5e-2), (batch, q[:4], q_ref[:4])

    print("KERNEL_OK")
</pallas_src>

<mosaic_0001>
module attributes {stable_mosaic.version = 11 : i64} {
  func.func @critic_kernel(%arg0: i32, %arg1: memref<2x13xf32, #tpu.memory_space<vmem>>, %arg2: memref<2x4xf32, #tpu.memory_space<vmem>>, %arg3: memref<13x256xbf16, #tpu.memory_space<vmem>>, %arg4: memref<4x256xbf16, #tpu.memory_space<vmem>>, %arg5: memref<1x256xf32, #tpu.memory_space<vmem>>, %arg6: memref<256x256xbf16, #tpu.memory_space<vmem>>, %arg7: memref<1x256xf32, #tpu.memory_space<vmem>>, %arg8: memref<256x256xbf16, #tpu.memory_space<vmem>>, %arg9: memref<1x256xf32, #tpu.memory_space<vmem>>, %arg10: memref<1x256xbf16, #tpu.memory_space<vmem>>, %arg11: memref<1xf32, #tpu.memory_space<smem>>, %arg12: memref<1x2xf32, #tpu.memory_space<vmem>>) attributes {dimension_semantics = [#tpu.dimension_semantics<parallel>], iteration_bounds = array<i64: 1>, scalar_prefetch = 0 : i64, scratch_operands = 0 : i64, tpu.core_type = #tpu.core_type<tc>, window_params = [{transform_indices = @transform_0, window_bounds = array<i64: 2, 13>}, {transform_indices = @transform_1, window_bounds = array<i64: 2, 4>}, {pipeline_mode = #tpu.pipeline_mode<synchronous>, transform_indices = @transform_2, window_bounds = array<i64: 13, 256>}, {pipeline_mode = #tpu.pipeline_mode<synchronous>, transform_indices = @transform_3, window_bounds = array<i64: 4, 256>}, {pipeline_mode = #tpu.pipeline_mode<synchronous>, transform_indices = @transform_4, window_bounds = array<i64: 1, 256>}, {pipeline_mode = #tpu.pipeline_mode<synchronous>, transform_indices = @transform_5, window_bounds = array<i64: 256, 256>}, {pipeline_mode = #tpu.pipeline_mode<synchronous>, transform_indices = @transform_6, window_bounds = array<i64: 1, 256>}, {pipeline_mode = #tpu.pipeline_mode<synchronous>, transform_indices = @transform_7, window_bounds = array<i64: 256, 256>}, {pipeline_mode = #tpu.pipeline_mode<synchronous>, transform_indices = @transform_8, window_bounds = array<i64: 1, 256>}, {pipeline_mode = #tpu.pipeline_mode<synchronous>, transform_indices = @transform_9, window_bounds = array<i64: 1, 256>}, {transform_indices = @transform_10, window_bounds = array<i64: 1>}, {transform_indices = @transform_11, window_bounds = array<i64: 1, 2>}]} {
    %c0 = arith.constant 0 : index
    %c0_0 = arith.constant 0 : index
    %0 = vector.load %arg1[%c0, %c0_0] : memref<2x13xf32, #tpu.memory_space<vmem>>, vector<2x13xf32>
    %1 = arith.truncf %0 : vector<2x13xf32> to vector<2x13xbf16>
    %c0_1 = arith.constant 0 : index
    %c0_2 = arith.constant 0 : index
    %2 = vector.load %arg2[%c0_1, %c0_2] : memref<2x4xf32, #tpu.memory_space<vmem>>, vector<2x4xf32>
    %3 = arith.truncf %2 : vector<2x4xf32> to vector<2x4xbf16>
    %c0_3 = arith.constant 0 : index
    %c0_4 = arith.constant 0 : index
    %4 = vector.load %arg3[%c0_3, %c0_4] : memref<13x256xbf16, #tpu.memory_space<vmem>>, vector<13x256xbf16>
    %cst = arith.constant dense<0.000000e+00> : vector<2x256xf32>
    %5 = tpu.matmul %1, %4, %cst {dimension_numbers = #tpu.dot_dimension_numbers<[1], [0], [0], [1], [0, 0, 1, 1], [], []>} : vector<2x13xbf16>, vector<13x256xbf16>, vector<2x256xf32> -> vector<2x256xf32>
    %c0_5 = arith.constant 0 : index
    %c0_6 = arith.constant 0 : index
    %6 = vector.load %arg4[%c0_5, %c0_6] : memref<4x256xbf16, #tpu.memory_space<vmem>>, vector<4x256xbf16>
    %cst_7 = arith.constant dense<0.000000e+00> : vector<2x256xf32>
    %7 = tpu.matmul %3, %6, %cst_7 {dimension_numbers = #tpu.dot_dimension_numbers<[1], [0], [0], [1], [0, 0, 1, 1], [], []>} : vector<2x4xbf16>, vector<4x256xbf16>, vector<2x256xf32> -> vector<2x256xf32>
    %8 = arith.addf %5, %7 : vector<2x256xf32>
    %c0_8 = arith.constant 0 : index
    %c0_9 = arith.constant 0 : index
    %9 = vector.load %arg5[%c0_8, %c0_9] : memref<1x256xf32, #tpu.memory_space<vmem>>, vector<1x256xf32>
    %10 = vector.broadcast %9 : vector<1x256xf32> to vector<2x256xf32>
    %11 = arith.addf %8, %10 : vector<2x256xf32>
    %cst_10 = arith.constant 0.000000e+00 : f32
    %12 = vector.broadcast %cst_10 : f32 to vector<2x256xf32>
    %13 = arith.maximumf %11, %12 : vector<2x256xf32>
    %14 = arith.truncf %13 : vector<2x256xf32> to vector<2x256xbf16>
    %c0_11 = arith.constant 0 : index
    %c0_12 = arith.constant 0 : index
    %15 = vector.load %arg6[%c0_11, %c0_12] : memref<256x256xbf16, #tpu.memory_space<vmem>>, vector<256x256xbf16>
    %cst_13 = arith.constant dense<0.000000e+00> : vector<2x256xf32>
    %16 = tpu.matmul %14, %15, %cst_13 {dimension_numbers = #tpu.dot_dimension_numbers<[1], [0], [0], [1], [0, 0, 1, 1], [], []>} : vector<2x256xbf16>, vector<256x256xbf16>, vector<2x256xf32> -> vector<2x256xf32>
    %c0_14 = arith.constant 0 : index
    %c0_15 = arith.constant 0 : index
    %17 = vector.load %arg7[%c0_14, %c0_15] : memref<1x256xf32, #tpu.memory_space<vmem>>, vector<1x256xf32>
    %18 = vector.broadcast %17 : vector<1x256xf32> to vector<2x256xf32>
    %19 = arith.addf %16, %18 : vector<2x256xf32>
    %cst_16 = arith.constant 0.000000e+00 : f32
    %20 = vector.broadcast %cst_16 : f32 to vector<2x256xf32>
    %21 = arith.maximumf %19, %20 : vector<2x256xf32>
    %22 = arith.truncf %21 : vector<2x256xf32> to vector<2x256xbf16>
    %c0_17 = arith.constant 0 : index
    %c0_18 = arith.constant 0 : index
    %23 = vector.load %arg8[%c0_17, %c0_18] : memref<256x256xbf16, #tpu.memory_space<vmem>>, vector<256x256xbf16>
    %cst_19 = arith.constant dense<0.000000e+00> : vector<2x256xf32>
    %24 = tpu.matmul %22, %23, %cst_19 {dimension_numbers = #tpu.dot_dimension_numbers<[1], [0], [0], [1], [0, 0, 1, 1], [], []>} : vector<2x256xbf16>, vector<256x256xbf16>, vector<2x256xf32> -> vector<2x256xf32>
    %c0_20 = arith.constant 0 : index
    %c0_21 = arith.constant 0 : index
    %25 = vector.load %arg9[%c0_20, %c0_21] : memref<1x256xf32, #tpu.memory_space<vmem>>, vector<1x256xf32>
    %26 = vector.broadcast %25 : vector<1x256xf32> to vector<2x256xf32>
    %27 = arith.addf %24, %26 : vector<2x256xf32>
    %cst_22 = arith.constant 0.000000e+00 : f32
    %28 = vector.broadcast %cst_22 : f32 to vector<2x256xf32>
    %29 = arith.maximumf %27, %28 : vector<2x256xf32>
    %30 = arith.truncf %29 : vector<2x256xf32> to vector<2x256xbf16>
    %c0_23 = arith.constant 0 : index
    %c0_24 = arith.constant 0 : index
    %31 = vector.load %arg10[%c0_23, %c0_24] : memref<1x256xbf16, #tpu.memory_space<vmem>>, vector<1x256xbf16>
    %cst_25 = arith.constant dense<0.000000e+00> : vector<1x2xf32>
    %32 = tpu.matmul %31, %30, %cst_25 {dimension_numbers = #tpu.dot_dimension_numbers<[1], [1], [0], [0], [0, 0, 1, 0], [], []>} : vector<1x256xbf16>, vector<2x256xbf16>, vector<1x2xf32> -> vector<1x2xf32>
    %c0_26 = arith.constant 0 : index
    %33 = memref.load %arg11[%c0_26] : memref<1xf32, #tpu.memory_space<smem>>
    %34 = vector.broadcast %33 : f32 to vector<1x2xf32>
    %35 = arith.addf %32, %34 : vector<1x2xf32>
    %c0_27 = arith.constant 0 : index
    %c0_28 = arith.constant 0 : index
    %36 = vector.load %arg12[%c0_27, %c0_28] : memref<1x2xf32, #tpu.memory_space<vmem>>, vector<1x2xf32>
    tpu.vector_store %arg12[%c0_27, %c0_28], %35 {strides = array<i32>} : memref<1x2xf32, #tpu.memory_space<vmem>>, vector<1x2xf32>,
    return
  }
  func.func @transform_0(%arg0: i32) -> (i32, i32) {
    %c0_i32 = arith.constant 0 : i32
    %c0_i32_0 = arith.constant 0 : i32
    return %arg0, %c0_i32 : i32, i32
  }
  func.func @transform_1(%arg0: i32) -> (i32, i32) {
    %c0_i32 = arith.constant 0 : i32
    %c0_i32_0 = arith.constant 0 : i32
    return %arg0, %c0_i32 : i32, i32
  }
  func.func @transform_2(%arg0: i32) -> (i32, i32) {
    %c0_i32 = arith.constant 0 : i32
    %c0_i32_0 = arith.constant 0 : i32
    %c0_i32_1 = arith.constant 0 : i32
    return %c0_i32, %c0_i32_0 : i32, i32
  }
  func.func @transform_3(%arg0: i32) -> (i32, i32) {
    %c0_i32 = arith.constant 0 : i32
    %c0_i32_0 = arith.constant 0 : i32
    %c0_i32_1 = arith.constant 0 : i32
    return %c0_i32, %c0_i32_0 : i32, i32
  }
  func.func @transform_4(%arg0: i32) -> (i32, i32) {
    %c0_i32 = arith.constant 0 : i32
    %c0_i32_0 = arith.constant 0 : i32
    %c0_i32_1 = arith.constant 0 : i32
    return %c0_i32, %c0_i32_0 : i32, i32
  }
  func.func @transform_5(%arg0: i32) -> (i32, i32) {
    %c0_i32 = arith.constant 0 : i32
    %c0_i32_0 = arith.constant 0 : i32
    %c0_i32_1 = arith.constant 0 : i32
    return %c0_i32, %c0_i32_0 : i32, i32
  }
  func.func @transform_6(%arg0: i32) -> (i32, i32) {
    %c0_i32 = arith.constant 0 : i32
    %c0_i32_0 = arith.constant 0 : i32
    %c0_i32_1 = arith.constant 0 : i32
    return %c0_i32, %c0_i32_0 : i32, i32
  }
  func.func @transform_7(%arg0: i32) -> (i32, i32) {
    %c0_i32 = arith.constant 0 : i32
    %c0_i32_0 = arith.constant 0 : i32
    %c0_i32_1 = arith.constant 0 : i32
    return %c0_i32, %c0_i32_0 : i32, i32
  }
  func.func @transform_8(%arg0: i32) -> (i32, i32) {
    %c0_i32 = arith.constant 0 : i32
    %c0_i32_0 = arith.constant 0 : i32
    %c0_i32_1 = arith.constant 0 : i32
    return %c0_i32, %c0_i32_0 : i32, i32
  }
  func.func @transform_9(%arg0: i32) -> (i32, i32) {
    %c0_i32 = arith.constant 0 : i32
    %c0_i32_0 = arith.constant 0 : i32
    %c0_i32_1 = arith.constant 0 : i32
    return %c0_i32, %c0_i32_0 : i32, i32
  }
  func.func @transform_10(%arg0: i32) -> i32 {
    %c0_i32 = arith.constant 0 : i32
    %c0_i32_0 = arith.constant 0 : i32
    return %c0_i32 : i32
  }
  func.func @transform_11(%arg0: i32) -> (i32, i32) {
    %c0_i32 = arith.constant 0 : i32
    %c0_i32_0 = arith.constant 0 : i32
    return %c0_i32, %arg0 : i32, i32
  }
}

</mosaic_0001>

<bundles_post_ra>
// kernel: _critic_forward_impl.1
= control target key start
LH: loop header
LB: loop body
LE: loop exit
PB: predicated region body
PF: predicated region fallthrough
CT: control target
= control target key end

     0   :  { %17 = vsyncpa [#allocation4], 0  ;;  %s1434_s0 = inlined_call_operand.hbm [shape: f32[2,13], index: 0, kind: input, shape index: {}]   ;;  %s1435_s1 = inlined_call_operand.hbm [shape: f32[2,4], index: 1, kind: input, shape index: {}]   ;;  %s1436_s2 = inlined_call_operand.hbm [shape: bf16[13,256], index: 2, kind: input, shape index: {}]   ;;  %s1437_s3 = inlined_call_operand.vmem [shape: bf16[4,256], index: 3, kind: input, shape index: {}]   ;;  %s1438_s4 = inlined_call_operand.hbm [shape: f32[1,256], index: 4, kind: input, shape index: {}]   ;;  %s1439_s5 = inlined_call_operand.hbm [shape: bf16[256,256], index: 5, kind: input, shape index: {}]   ;;  %s1440_s6 = inlined_call_operand.vmem [shape: f32[1,256], index: 6, kind: input, shape index: {}]   ;;  %s1441_s7 = inlined_call_operand.hbm [shape: bf16[256,256], index: 7, kind: input, shape index: {}]   ;;  %s1442_s8 = inlined_call_operand.vmem [shape: f32[1,256], index: 8, kind: input, shape index: {}]   ;;  %s1443_s9 = inlined_call_operand.vmem [shape: bf16[1,256], index: 9, kind: input, shape index: {}]   ;;  %s1444_s10 = inlined_call_operand.<no memory space> [shape: f32[1], index: 10, kind: input, shape index: {}]   ;;  %s1445_s11 = inlined_call_operand.hbm [shape: f32[1,2], index: 11, kind: output, shape index: {}]  }
   0x1   :  { %18 = vsyncpa [#allocation7], 0 }
   0x2   :  { %19 = vsyncpa [#allocation10], 0 }
   0x3   :  { %20 = vsyncpa [#allocation13], 0  ;;  %s38_s19 = sshll.u32 %s1435_s1, 4  ;;  %s39_s19 = int_to_ptr.hbm [resolvable:$true] %s38_s19 }
   0x4   :  { %21 = vsyncpa [#allocation5], 0  ;;  %s1322_s20 = smov [#allocation6]   ;;  %s64_s24 = sshll.u32 %s1438_s4, 4  ;;  %s65_s24 = int_to_ptr.hbm [resolvable:$true] %s64_s24 }
   0x5   :  { %s40_s21 = sshll.u32 %s1322_s20, 4  ;;  %s1323_s25 = smov [#allocation9]   ;;  %s41_s21 = int_to_ptr.vmem [resolvable:$true] %s40_s21 }
   0x6   :  { %43 = dma.hbm_to_vmem [thread:$0]  %s39_s19, 32, %s41_s21, [#allocation7]  }
   0x7   :  { %s66_s26 = sshll.u32 %s1323_s25, 4  ;;  %s27_s29 = sshll.u32 %s1434_s0, 4  ;;  %s67_s26 = int_to_ptr.vmem [resolvable:$true] %s66_s26  ;;  %s28_s29 = int_to_ptr.hbm [resolvable:$true] %s27_s29 }
   0x8   :  { %69 = dma.hbm_to_vmem [thread:$0]  %s65_s24, 32, %s67_s26, [#allocation10]  }
   0x9   :  { %s48_s12 = sshll.u32 %s1436_s2, 4  ;;  %s1324_s13 = smov [#allocation3]   ;;  %s49_s12 = int_to_ptr.hbm [resolvable:$true] %s48_s12 }
   0xa   :  { %s29_s14 = sshll.u32 %s1324_s13, 4  ;;  %s1325_s4 = smov [#allocation8]   ;;  %s30_s14 = int_to_ptr.vmem [resolvable:$true] %s29_s14 }
   0xb   :  { %32 = dma.hbm_to_vmem [thread:$0]  %s28_s29, 32, %s30_s14, [#allocation4]  }
   0xc   :  { %s50_s15 = sshll.u32 %s1325_s4, 4  ;;  %s1326_s16 = smov 128   ;;  %s51_s15 = int_to_ptr.vmem [resolvable:$true] %s50_s15 }
   0xd   :  { %s1327_s17 = smov 8   ;;  %s74_s19 = sshll.u32 %s1439_s5, 4  ;;  %s75_s19 = int_to_ptr.hbm [resolvable:$true] %s74_s19 }
   0xe   :  { %56 = dma.hbm_to_vmem [thread:$0]  %s49_s12, 256, %s51_s15, [#allocation7], %s1326_s16, %s1326_s16, %s1327_s17  }
   0xf   :  { %s1328_s20 = smov [#allocation11]   ;;  %s89_s23 = sshll.u32 %s1441_s7, 4  ;;  %s90_s23 = int_to_ptr.hbm [resolvable:$true] %s89_s23 }
  0x10   :  { %s76_s21 = sshll.u32 %s1328_s20, 4  ;;  %s1329_s24 = smov [#allocation12]   ;;  %s77_s21 = int_to_ptr.vmem [resolvable:$true] %s76_s21 }
  0x11   :  { %82 = dma.hbm_to_vmem [thread:$0]  %s75_s19, 4096, %s77_s21, [#allocation10], %s1326_s16, %s1326_s16, %s1327_s17  }
  0x12   :  { %s91_s25 = sshll.u32 %s1329_s24, 4  ;;  %s92_s25 = int_to_ptr.vmem [resolvable:$true] %s91_s25 }
  0x13   :  { %97 = dma.hbm_to_vmem [thread:$0]  %s90_s23, 4096, %s92_s25, [#allocation13], %s1326_s16, %s1326_s16, %s1327_s17  }
  0x14   :  { %1312 = dma.done.wait [#allocation4], 32  }
  0x15   :  { %1313 = vsyncadd [#allocation4], 4294967264 }
  0x16   :  { %1314 = dma.done.wait [#allocation7], 288  }
  0x17   :  { %1315 = vsyncadd [#allocation7], 4294967008 }
  0x18   :  { %1316 = dma.done.wait [#allocation10], 4128  }
  0x19   :  { %1317 = vsyncadd [#allocation10], 4294963168 }
  0x1a   :  { %1318 = dma.done.wait [#allocation13], 4096  }
  0x1b   :  { %1319 = vsyncadd [#allocation13], 4294963200  ;;  %vm187_vm0 = vcmask 1045504   ;;  %vm188_vm1 = vcmask 1046528   ;;  %v1330_v0 = vmov 65535   ;;  %vm183_vm2 = vcmask 105472  }
  0x1c   :  { %v189_v1 = vsel %vm187_vm0, 4294967295, %v1330_v0  ;;  %v804_v3 = vld [vmem:[#allocation8] sm:$0xf]  ;;  %v1069_v4 = vld [vmem:[#allocation8 + $0x4] sm:$0x70]  ;;  %vm144_vm3 = vcmask 1041408  }
  0x1d   :  { %v190_v2 = vsel %vm188_vm1, %v189_v1, 0  ;;  %v1068_v5 = vld [vmem:[#allocation8 + $0x4] sm:$0xf]  ;;  %v805_v6 = vor.u32 %v1069_v4, %v804_v3  ;;  %v806_v7 = vld [vmem:[#allocation8 + $0x8] sm:$0x70]  ;;  %vm140_vm4 = vcmask 31744  }
  0x1e   :  { %v129_v8 = vld [vmem:[#allocation3] sm:$0x3]  ;;  %v135_v9 = vld [vmem:[%s1437_s3] sm:$0xf]  ;;  %v809_v10 = vor.u32 %v1068_v5, %v806_v7  ;;  %v870_v12 = vld [vmem:[#allocation11 + $0x70] sm:$0xf] }
  0x1f   :  { %137 = vst [vmem:[#allocation1] ss:$4 sm:$0xff] %v135_v9  ;;  %v192_v11 = vand.u32 %v805_v6, %v190_v2  ;;  %v1085_v13 = vld [vmem:[#allocation11 + $0x74] sm:$0xf0]  ;;  %v130_v15 = vpack.c.bf16 %v129_v8, %v129_v8  ;;  %v934_v16 = vld [vmem:[#allocation11 + $0xf0] sm:$0xf] }
  0x20   :  { %v195_v14 = vand.u32 %v809_v10, %v190_v2  ;;  %v1084_v17 = vld [vmem:[#allocation11 + $0x74] sm:$0xf]  ;;  %v872_v18 = vld [vmem:[#allocation11 + $0x78] sm:$0xf0]  ;;  %v1101_v19 = vld [vmem:[#allocation11 + $0xf4] sm:$0xf0]  ;;  %v871_v31 = vor.u32 %v1085_v13, %v870_v12 }
  0x21   :  { %204 = vmatpush.bf16.msra.mxu2 %v192_v11  ;;  %v875_v20 = vor.u32 %v1084_v17, %v872_v18  ;;  %v1100_v21 = vld [vmem:[#allocation11 + $0xf4] sm:$0xf]  ;;  %v936_v22 = vld [vmem:[#allocation11 + $0xf8] sm:$0xf0]  ;;  %v743_v23 = vld [vmem:[%s1443_s9] sm:$0x3]  ;;  %v935_v32 = vor.u32 %v1101_v19, %v934_v16 }
  0x22   :  { %217 = vmatpush.bf16.msra.mxu3 %v195_v14  ;;  %v131_v24 = vld [vmem:[#allocation6] sm:$0x3]  ;;  %v939_v25 = vor.u32 %v1100_v21, %v936_v22  ;;  %v862_v26 = vld [vmem:[#allocation11 + $0x60] sm:$0xf]  ;;  %v1083_v27 = vld [vmem:[#allocation11 + $0x64] sm:$0xf0] }
  0x23   :  { %v1082_v28 = vld [vmem:[#allocation11 + $0x64] sm:$0xf]  ;;  %v864_v29 = vld [vmem:[#allocation11 + $0x68] sm:$0xf0]  ;;  %v926_v33 = vld [vmem:[#allocation11 + $0xe0] sm:$0xf]  ;;  %v132_v42 = vpack.c.bf16 %v131_v24, %v131_v24  ;;  %v863_v45 = vor.u32 %v1083_v27, %v862_v26 }
  0x24   :  { %v1098_v30 = vld [vmem:[#allocation11 + $0xe4] sm:$0xf]  ;;  %810 = vmatmul.msk.bf16.vlgmr.msra.gmra.mxu2 %vm183_vm2, %v130_v15  ;;  %v1099_v34 = vld [vmem:[#allocation11 + $0xe4] sm:$0xf0]  ;;  %v928_v35 = vld [vmem:[#allocation11 + $0xe8] sm:$0xf0]  ;;  %v867_v38 = vor.u32 %v1082_v28, %v864_v29 }
  0x25   :  { %459 = vmatpush.bf16.msrb.mxu2 %v875_v20  ;;  %811 = vmatmul.msk.bf16.vlgmr.msra.gmra.mxu3 %vm183_vm2, %v130_v15  ;;  %v931_v39 = vor.u32 %v1098_v30, %v928_v35  ;;  %v1080_v43 = vld [vmem:[#allocation11 + $0x54] sm:$0xf]  ;;  %v856_v44 = vld [vmem:[#allocation11 + $0x58] sm:$0xf0]  ;;  %v927_v46 = vor.u32 %v1099_v34, %v926_v33  ;;  %v854_v47 = vld [vmem:[#allocation11 + $0x50] sm:$0xf] }
  0x26   :  { %472 = vmatpush.bf16.msrb.mxu3 %v939_v25  ;;  %v138_v36 = vld.sshfl [vmem:[#allocation1] sm:$0xff pattern:$0x73625140]  ;;  %v139_v37 = vld.sshfl [vmem:[#allocation1 + $0x8] sm:$0xff pattern:$0x73625140]  ;;  %v859_v53 = vor.u32 %v1080_v43, %v856_v44 }
  0x27   :  { %v145_v40 = vsel %vm144_vm3, %v138_v36, 0  ;;  %v147_v41 = vsel %vm144_vm3, %v139_v37, 0  ;;  %747 = vst [vmem:[#allocation1] ss:$9 sm:$0xff] %v743_v23  ;;  %v1096_v48 = vld [vmem:[#allocation11 + $0xd4] sm:$0xf] }
  0x28   :  { %156 = vmatpush.bf16.msra.mxu0 %v145_v40  ;;  %169 = vmatpush.bf16.msra.mxu1 %v147_v41  ;;  %v920_v49 = vld [vmem:[#allocation11 + $0xd8] sm:$0xf0]  ;;  %v1081_v50 = vld [vmem:[#allocation11 + $0x54] sm:$0xf0]  ;;  %v918_v51 = vld [vmem:[#allocation11 + $0xd0] sm:$0xf] }
  0x29   :  { %460 = vmatpush.bf16.msrb.mxu2 %v867_v38  ;;  %v1097_v52 = vld [vmem:[#allocation11 + $0xd4] sm:$0xf0]  ;;  %v923_v54 = vor.u32 %v1096_v48, %v920_v49  ;;  %v1078_v55 = vld [vmem:[#allocation11 + $0x44] sm:$0xf]  ;;  %v848_v56 = vld [vmem:[#allocation11 + $0x48] sm:$0xf0]  ;;  %v855_v59 = vor.u32 %v1081_v50, %v854_v47 }
  0x2a   :  { %473 = vmatpush.bf16.msrb.mxu3 %v931_v39  ;;  %v1094_v57 = vld [vmem:[#allocation11 + $0xc4] sm:$0xf]  ;;  %v912_v58 = vld [vmem:[#allocation11 + $0xc8] sm:$0xf0]  ;;  %v919_v60 = vor.u32 %v1097_v52, %v918_v51  ;;  %v846_v61 = vld [vmem:[#allocation11 + $0x40] sm:$0xf]  ;;  %v851_v1 = vor.u32 %v1078_v55, %v848_v56 }
  0x2b   :  { %800 = vmatmul.msk.bf16.vlgmr.msra.gmra.mxu0 %vm140_vm4, %v132_v42  ;;  %801 = vmatmul.msk.bf16.vlgmr.msra.gmra.mxu1 %vm140_vm4, %v132_v42  ;;  %v1079_v62 = vld [vmem:[#allocation11 + $0x44] sm:$0xf0]  ;;  %v910_v63 = vld [vmem:[#allocation11 + $0xc0] sm:$0xf]  ;;  %v915_v2 = vor.u32 %v1094_v57, %v912_v58  ;;  %v1076_v3 = vld [vmem:[#allocation11 + $0x34] sm:$0xf] }
  0x2c   :  { %433 = vmatpush.bf16.msrb.mxu0 %v871_v31  ;;  %446 = vmatpush.bf16.msrb.mxu1 %v935_v32  ;;  %v1095_v0 = vld [vmem:[#allocation11 + $0xc4] sm:$0xf0]  ;;  %v840_v4 = vld [vmem:[#allocation11 + $0x38] sm:$0xf0]  ;;  %v1092_v5 = vld [vmem:[#allocation11 + $0xb4] sm:$0xf]  ;;  %v847_v7 = vor.u32 %v1079_v62, %v846_v61 }
  0x2d   :  { %461 = vmatpush.bf16.msrb.mxu2 %v859_v53  ;;  %v904_v6 = vld [vmem:[#allocation11 + $0xb8] sm:$0xf0]  ;;  %v911_v8 = vor.u32 %v1095_v0, %v910_v63  ;;  %v838_v9 = vld [vmem:[#allocation11 + $0x30] sm:$0xf]  ;;  %v1077_v10 = vld [vmem:[#allocation11 + $0x34] sm:$0xf0]  ;;  %v843_v13 = vor.u32 %v1076_v3, %v840_v4 }
  0x2e   :  { %474 = vmatpush.bf16.msrb.mxu3 %v923_v54  ;;  %v902_v11 = vld [vmem:[#allocation11 + $0xb0] sm:$0xf]  ;;  %v1093_v12 = vld [vmem:[#allocation11 + $0xb4] sm:$0xf0]  ;;  %v907_v14 = vor.u32 %v1092_v5, %v904_v6  ;;  %v1074_v15 = vld [vmem:[#allocation11 + $0x24] sm:$0xf]  ;;  %v839_v19 = vor.u32 %v1077_v10, %v838_v9 }
  0x2f   :  { %v832_v16 = vld [vmem:[#allocation11 + $0x28] sm:$0xf0]  ;;  %v1090_v17 = vld [vmem:[#allocation11 + $0xa4] sm:$0xf]  ;;  %v903_v20 = vor.u32 %v1093_v12, %v902_v11  ;;  %v830_v21 = vld [vmem:[#allocation11 + $0x20] sm:$0xf] }
  0x30   :  { %434 = vmatpush.bf16.msrb.mxu0 %v863_v45  ;;  %447 = vmatpush.bf16.msrb.mxu1 %v927_v46  ;;  %v896_v18 = vld [vmem:[#allocation11 + $0xa8] sm:$0xf0]  ;;  %v1075_v22 = vld [vmem:[#allocation11 + $0x24] sm:$0xf0]  ;;  %v894_v23 = vld [vmem:[#allocation11 + $0xa0] sm:$0xf]  ;;  %v835_v25 = vor.u32 %v1074_v15, %v832_v16 }
  0x31   :  { %462 = vmatpush.bf16.msrb.mxu2 %v851_v1  ;;  %v1091_v24 = vld [vmem:[#allocation11 + $0xa4] sm:$0xf0]  ;;  %v899_v26 = vor.u32 %v1090_v17, %v896_v18  ;;  %v831_v27 = vor.u32 %v1075_v22, %v830_v21  ;;  %v822_v29 = vld [vmem:[#allocation11 + $0x10] sm:$0xf]  ;;  %v1073_v30 = vld [vmem:[#allocation11 + $0x14] sm:$0xf0] }
  0x32   :  { %475 = vmatpush.bf16.msrb.mxu3 %v915_v2  ;;  %v895_v28 = vor.u32 %v1091_v24, %v894_v23  ;;  %v886_v31 = vld [vmem:[#allocation11 + $0x90] sm:$0xf]  ;;  %v823_v32 = vor.u32 %v1073_v30, %v822_v29  ;;  %v1089_v33 = vld [vmem:[#allocation11 + $0x94] sm:$0xf0]  ;;  %v1072_v34 = vld [vmem:[#allocation11 + $0x14] sm:$0xf] }
  0x33   :  { %v887_v35 = vor.u32 %v1089_v33, %v886_v31  ;;  %v824_v36 = vld [vmem:[#allocation11 + $0x18] sm:$0xf0]  ;;  %v1088_v37 = vld [vmem:[#allocation11 + $0x94] sm:$0xf]  ;;  %v814_v41 = vld [vmem:[#allocation11] sm:$0xf] }
  0x34   :  { %435 = vmatpush.bf16.msrb.mxu0 %v855_v59  ;;  %448 = vmatpush.bf16.msrb.mxu1 %v919_v60  ;;  %v827_v38 = vor.u32 %v1072_v34, %v824_v36  ;;  %v888_v39 = vld [vmem:[#allocation11 + $0x98] sm:$0xf0]  ;;  %v1071_v42 = vld [vmem:[#allocation11 + $0x4] sm:$0xf0]  ;;  %v878_v43 = vld [vmem:[#allocation11 + $0x80] sm:$0xf] }
  0x35   :  { %463 = vmatpush.bf16.msrb.mxu2 %v843_v13  ;;  %v891_v40 = vor.u32 %v1088_v37, %v888_v39  ;;  %v815_v44 = vor.u32 %v1071_v42, %v814_v41  ;;  %v1087_v45 = vld [vmem:[#allocation11 + $0x84] sm:$0xf0]  ;;  %v1070_v46 = vld [vmem:[#allocation11 + $0x4] sm:$0xf]  ;;  %v816_v47 = vld [vmem:[#allocation11 + $0x8] sm:$0xf0] }
  0x36   :  { %476 = vmatpush.bf16.msrb.mxu3 %v907_v14  ;;  %v879_v48 = vor.u32 %v1087_v45, %v878_v43  ;;  %v819_v49 = vor.u32 %v1070_v46, %v816_v47  ;;  %v1086_v50 = vld [vmem:[#allocation11 + $0x84] sm:$0xf]  ;;  %v880_v51 = vld [vmem:[#allocation11 + $0x88] sm:$0xf0]  ;;  %v998_v53 = vld [vmem:[#allocation12 + $0x70] sm:$0xf] }
  0x37   :  { %v883_v52 = vor.u32 %v1086_v50, %v880_v51  ;;  %v1117_v54 = vld [vmem:[#allocation12 + $0x74] sm:$0xf0]  ;;  %v1116_v55 = vld [vmem:[#allocation12 + $0x74] sm:$0xf]  ;;  %v1000_v57 = vld [vmem:[#allocation12 + $0x78] sm:$0xf0] }
  0x38   :  { %436 = vmatpush.bf16.msrb.mxu0 %v847_v7  ;;  %449 = vmatpush.bf16.msrb.mxu1 %v911_v8  ;;  %v999_v56 = vor.u32 %v1117_v54, %v998_v53  ;;  %v990_v58 = vld [vmem:[#allocation12 + $0x60] sm:$0xf]  ;;  %v1115_v59 = vld [vmem:[#allocation12 + $0x64] sm:$0xf0]  ;;  %v1003_v60 = vor.u32 %v1116_v55, %v1000_v57  ;;  %v1114_v61 = vld [vmem:[#allocation12 + $0x64] sm:$0xf] }
  0x39   :  { %464 = vmatpush.bf16.msrb.mxu2 %v835_v25  ;;  %v992_v62 = vld [vmem:[#allocation12 + $0x68] sm:$0xf0]  ;;  %v1062_v63 = vld [vmem:[#allocation12 + $0xf0] sm:$0xf]  ;;  %v991_v0 = vor.u32 %v1115_v59, %v990_v58  ;;  %v1133_v1 = vld [vmem:[#allocation12 + $0xf4] sm:$0xf0] }
  0x3a   :  { %477 = vmatpush.bf16.msrb.mxu3 %v899_v26  ;;  %v1132_v2 = vld [vmem:[#allocation12 + $0xf4] sm:$0xf]  ;;  %v1064_v3 = vld [vmem:[#allocation12 + $0xf8] sm:$0xf0]  ;;  %v995_v4 = vor.u32 %v1114_v61, %v992_v62  ;;  %v1063_v5 = vor.u32 %v1133_v1, %v1062_v63  ;;  %v982_v7 = vld [vmem:[#allocation12 + $0x50] sm:$0xf] }
  0x3b   :  { %v1067_v6 = vor.u32 %v1132_v2, %v1064_v3  ;;  %v1113_v8 = vld [vmem:[#allocation12 + $0x54] sm:$0xf0]  ;;  %v1112_v9 = vld [vmem:[#allocation12 + $0x54] sm:$0xf]  ;;  %v984_v10 = vld [vmem:[#allocation12 + $0x58] sm:$0xf0] }
  0x3c   :  { %437 = vmatpush.bf16.msrb.mxu0 %v839_v19  ;;  %450 = vmatpush.bf16.msrb.mxu1 %v903_v20  ;;  %v1054_v11 = vld [vmem:[#allocation12 + $0xe0] sm:$0xf]  ;;  %v1131_v12 = vld [vmem:[#allocation12 + $0xe4] sm:$0xf0]  ;;  %v1130_v14 = vld [vmem:[#allocation12 + $0xe4] sm:$0xf]  ;;  %v983_v16 = vor.u32 %v1113_v8, %v982_v7  ;;  %v987_v20 = vor.u32 %v1112_v9, %v984_v10 }
  0x3d   :  { %465 = vmatpush.bf16.msrb.mxu2 %v827_v38  ;;  %v1055_v13 = vor.u32 %v1131_v12, %v1054_v11  ;;  %v1056_v15 = vld [vmem:[#allocation12 + $0xe8] sm:$0xf0]  ;;  %v974_v18 = vld [vmem:[#allocation12 + $0x40] sm:$0xf]  ;;  %v1111_v19 = vld [vmem:[#allocation12 + $0x44] sm:$0xf0] }
  0x3e   :  { %478 = vmatpush.bf16.msrb.mxu3 %v891_v40  ;;  %v1059_v17 = vor.u32 %v1130_v14, %v1056_v15  ;;  %v1046_v21 = vld [vmem:[#allocation12 + $0xd0] sm:$0xf]  ;;  %v1129_v22 = vld [vmem:[#allocation12 + $0xd4] sm:$0xf0]  ;;  %v1128_v23 = vld [vmem:[#allocation12 + $0xd4] sm:$0xf]  ;;  %v975_v30 = vor.u32 %v1111_v19, %v974_v18 }
  0x3f   :  { %v1110_v24 = vld [vmem:[#allocation12 + $0x44] sm:$0xf]  ;;  %v976_v25 = vld [vmem:[#allocation12 + $0x48] sm:$0xf0]  ;;  %v1048_v26 = vld [vmem:[#allocation12 + $0xd8] sm:$0xf0] }
  0x40   :  { %438 = vmatpush.bf16.msrb.mxu0 %v831_v27  ;;  %451 = vmatpush.bf16.msrb.mxu1 %v895_v28  ;;  %v1047_v27 = vor.u32 %v1129_v22, %v1046_v21  ;;  %v1051_v28 = vor.u32 %v1128_v23, %v1048_v26  ;;  %v1038_v29 = vld [vmem:[#allocation12 + $0xc0] sm:$0xf]  ;;  %v1127_v31 = vld [vmem:[#allocation12 + $0xc4] sm:$0xf0]  ;;  %v1040_v33 = vld [vmem:[#allocation12 + $0xc8] sm:$0xf0]  ;;  %v979_v34 = vor.u32 %v1110_v24, %v976_v25 }
  0x41   :  { %466 = vmatpush.bf16.msrb.mxu2 %v819_v49  ;;  %v1109_v36 = vld [vmem:[#allocation12 + $0x34] sm:$0xf0]  ;;  %v1108_v37 = vld [vmem:[#allocation12 + $0x34] sm:$0xf]  ;;  %v968_v38 = vld [vmem:[#allocation12 + $0x38] sm:$0xf0]  ;;  %v1039_v39 = vor.u32 %v1127_v31, %v1038_v29 }
  0x42   :  { %479 = vmatpush.bf16.msrb.mxu3 %v883_v52  ;;  %v971_v42 = vor.u32 %v1108_v37, %v968_v38  ;;  %v958_v43 = vld [vmem:[#allocation12 + $0x20] sm:$0xf]  ;;  %v1106_v45 = vld [vmem:[#allocation12 + $0x24] sm:$0xf]  ;;  %v960_v46 = vld [vmem:[#allocation12 + $0x28] sm:$0xf0] }
  0x43   :  { %v223_v47 = vld [vmem:[#allocation9] sm:$0x3]  ;;  %v963_v49 = vor.u32 %v1106_v45, %v960_v46  ;;  %v950_v10 = vld [vmem:[#allocation12 + $0x10] sm:$0xf]  ;;  %v1105_v11 = vld [vmem:[#allocation12 + $0x14] sm:$0xf0] }
  0x44   :  { %439 = vmatpush.bf16.msrb.mxu0 %v823_v32  ;;  %452 = vmatpush.bf16.msrb.mxu1 %v887_v35  ;;  %v1126_v32 = vld [vmem:[#allocation12 + $0xc4] sm:$0xf]  ;;  %v966_v35 = vld [vmem:[#allocation12 + $0x30] sm:$0xf]  ;;  %v225_v52 = vperm.slane %v223_v47, 0  ;;  %v226_v53 = vperm.slane %v223_v47, 1 }
  0x45   :  { %713 = vmatpush.bf16.msra.mxu2 %v1003_v60  ;;  %v1043_v40 = vor.u32 %v1126_v32, %v1040_v33  ;;  %v967_v41 = vor.u32 %v1109_v36, %v966_v35  ;;  %v1032_v8 = vld [vmem:[#allocation12 + $0xb8] sm:$0xf0]  ;;  %v1104_v12 = vld [vmem:[#allocation12 + $0x14] sm:$0xf]  ;;  %v1122_v18 = vld [vmem:[#allocation12 + $0xa4] sm:$0xf] }
  0x46   :  { %726 = vmatpush.bf16.msra.mxu3 %v1067_v6  ;;  %v1124_v6 = vld [vmem:[#allocation12 + $0xb4] sm:$0xf]  ;;  %v952_v14 = vld [vmem:[#allocation12 + $0x18] sm:$0xf0]  ;;  %v942_v22 = vld [vmem:[#allocation12] sm:$0xf] }
  0x47   :  { %v1035_v9 = vor.u32 %v1124_v6, %v1032_v8  ;;  %v955_v15 = vor.u32 %v1104_v12, %v952_v14  ;;  %v1103_v23 = vld [vmem:[#allocation12 + $0x4] sm:$0xf0]  ;;  %v1102_v24 = vld [vmem:[#allocation12 + $0x4] sm:$0xf]  ;;  %v944_v26 = vld [vmem:[#allocation12 + $0x8] sm:$0xf0] }
  0x48   :  { %440 = vmatpush.bf16.msrb.mxu0 %v815_v44  ;;  %453 = vmatpush.bf16.msrb.mxu1 %v879_v48  ;;  %v1107_v44 = vld [vmem:[#allocation12 + $0x24] sm:$0xf0]  ;;  %v943_v25 = vor.u32 %v1103_v23, %v942_v22  ;;  %v1121_v29 = vld [vmem:[#allocation12 + $0x94] sm:$0xf0]  ;;  %v1120_v31 = vld [vmem:[#allocation12 + $0x94] sm:$0xf] }
  0x49   :  { %714 = vmatpush.bf16.msra.mxu2 %v995_v4  ;;  %v959_v48 = vor.u32 %v1107_v44, %v958_v43  ;;  %v1030_v4 = vld [vmem:[#allocation12 + $0xb0] sm:$0xf]  ;;  %v1016_v32 = vld [vmem:[#allocation12 + $0x98] sm:$0xf0]  ;;  %v1119_v35 = vld [vmem:[#allocation12 + $0x84] sm:$0xf0] }
  0x4a   :  { %727 = vmatpush.bf16.msra.mxu3 %v1059_v17  ;;  %v1123_v17 = vld [vmem:[#allocation12 + $0xa4] sm:$0xf0]  ;;  %v1019_v33 = vor.u32 %v1120_v31, %v1016_v32  ;;  %v1118_v36 = vld [vmem:[#allocation12 + $0x84] sm:$0xf]  ;;  %v1008_v38 = vld [vmem:[#allocation12 + $0x88] sm:$0xf0] }
  0x4b   :  { %s1331_s1 = smov [#allocation14]   ;;  %s787_s14 = sshll.u32 %s1445_s11, 4  ;;  %vm778_vm5 = vcmask 8192   ;;  %s788_s14 = int_to_ptr.hbm [resolvable:$true] %s787_s14 }
  0x4c   :  { %687 = vmatpush.bf16.msra.mxu0 %v999_v56  ;;  %700 = vmatpush.bf16.msra.mxu1 %v1063_v5  ;;  %v1125_v5 = vld [vmem:[#allocation12 + $0xb4] sm:$0xf0]  ;;  %s785_s30 = sshll.u32 %s1331_s1, 4  ;;  %s786_s30 = int_to_ptr.vmem [resolvable:$true] %s785_s30 }
  0x4d   :  { %715 = vmatpush.bf16.msra.mxu2 %v987_v20  ;;  %v1031_v7 = vor.u32 %v1125_v5, %v1030_v4  ;;  %v1024_v20 = vld [vmem:[#allocation12 + $0xa8] sm:$0xf0] }
  0x4e   :  { %728 = vmatpush.bf16.msra.mxu3 %v1051_v28  ;;  %v1027_v21 = vor.u32 %v1122_v18, %v1024_v20  ;;  %v1014_v28 = vld [vmem:[#allocation12 + $0x90] sm:$0xf] }
  0x50   :  { %688 = vmatpush.bf16.msra.mxu0 %v991_v0  ;;  %701 = vmatpush.bf16.msra.mxu1 %v1055_v13  ;;  %v951_v13 = vor.u32 %v1105_v11, %v950_v10 }
  0x51   :  { %716 = vmatpush.bf16.msra.mxu2 %v979_v34  ;;  %v1006_v34 = vld [vmem:[#allocation12 + $0x80] sm:$0xf] }
  0x52   :  { %729 = vmatpush.bf16.msra.mxu3 %v1043_v40  ;;  %v1007_v37 = vor.u32 %v1119_v35, %v1006_v34  ;;  %v267_v40 = vld [vmem:[%s1440_s6] sm:$0x3] }
  0x53   :  { %v270_v46 = vperm.slane %v267_v40, 1 }
  0x54   :  { %689 = vmatpush.bf16.msra.mxu0 %v983_v16  ;;  %702 = vmatpush.bf16.msra.mxu1 %v1047_v27  ;;  %v1022_v16 = vld [vmem:[#allocation12 + $0xa0] sm:$0xf]  ;;  %v947_v27 = vor.u32 %v1102_v24, %v944_v26 }
  0x55   :  { %717 = vmatpush.bf16.msra.mxu2 %v971_v42  ;;  %v1023_v19 = vor.u32 %v1123_v17, %v1022_v16  ;;  %v745_v16 = vstv %s1444_s10 }
  0x56   :  { %730 = vmatpush.bf16.msra.mxu3 %v1035_v9 }
  0x58   :  { %690 = vmatpush.bf16.msra.mxu0 %v975_v30  ;;  %703 = vmatpush.bf16.msra.mxu1 %v1039_v39  ;;  %v1015_v30 = vor.u32 %v1121_v29, %v1014_v28  ;;  %v1011_v39 = vor.u32 %v1118_v36, %v1008_v38 }
  0x59   :  { %718 = vmatpush.bf16.msra.mxu2 %v963_v49 }
  0x5a   :  { %731 = vmatpush.bf16.msra.mxu3 %v1027_v21 }
  0x5c   :  { %691 = vmatpush.bf16.msra.mxu0 %v967_v41  ;;  %704 = vmatpush.bf16.msra.mxu1 %v1031_v7  ;;  %v269_v41 = vperm.slane %v267_v40, 0 }
  0x5d   :  { %719 = vmatpush.bf16.msra.mxu2 %v955_v15  ;;  %v749_v15 = vld [vmem:[#allocation1 + $0x9] sm:$0xff] }
  0x5e   :  { %732 = vmatpush.bf16.msra.mxu3 %v1019_v33 }
  0x60   :  { %692 = vmatpush.bf16.msra.mxu0 %v959_v48  ;;  %705 = vmatpush.bf16.msra.mxu1 %v1023_v19 }
  0x61   :  { %720 = vmatpush.bf16.msra.mxu2 %v947_v27 }
  0x62   :  { %733 = vmatpush.bf16.msra.mxu3 %v1011_v39 }
  0x64   :  { %693 = vmatpush.bf16.msra.mxu0 %v951_v13  ;;  %706 = vmatpush.bf16.msra.mxu1 %v1015_v30  ;;  %v748_v13 = vld [vmem:[#allocation1] sm:$0xff] }
  0x68   :  { %694 = vmatpush.bf16.msra.mxu0 %v943_v25  ;;  %707 = vmatpush.bf16.msra.mxu1 %v1007_v37 }
  0xa7   :  { %v206_v54 = vpop.f32.mrf.mxu2 }
  0xa8   :  { %v158_v50 = vpop.f32.mrf.mxu0  ;;  %v171_v51 = vpop.f32.mrf.mxu1 }
  0xa9   :  { %v219_v55 = vpop.f32.mrf.mxu3  ;;  %v207_v56 = vadd.f32 %v206_v54, %v158_v50 }
  0xaa   :  { %v220_v57 = vadd.f32 %v219_v55, %v171_v51 }
  0xab   :  { %v229_v58 = vadd.f32 %v225_v52, %v207_v56 }
  0xac   :  { %v230_v59 = vadd.f32 %v226_v53, %v220_v57 }
  0xad   :  { %v231_v60 = vmax.f32 %v229_v58, 0.0 }
  0xae   :  { %v232_v61 = vmax.f32 %v230_v59, 0.0  ;;  %v521_v59 = vld [vmem:[%s1442_s8] sm:$0x3] }
  0xaf   :  { %v233_v62 = vpack.c.bf16 %v231_v60, %v231_v60  ;;  %v208_v2 = vpop.f32.mrf.mxu2 }
  0xb0   :  { %v234_v63 = vpack.c.bf16 %v232_v61, %v232_v61  ;;  %v160_v0 = vpop.f32.mrf.mxu0  ;;  %v173_v1 = vpop.f32.mrf.mxu1  ;;  %v523_v61 = vperm.slane %v521_v59, 0  ;;  %v524_v2 = vperm.slane %v521_v59, 1 }
  0xb1   :  { %v221_v3 = vpop.f32.mrf.mxu3  ;;  %441 = vmatmul.bf16.vlgmr.msrb.gmra.mxu0 %v233_v62  ;;  %467 = vmatmul.bf16.vlgmr.msrb.gmra.mxu2 %v233_v62 }
  0xb2   :  { %454 = vmatmul.bf16.vlgmr.msrb.gmra.mxu1 %v234_v63  ;;  %480 = vmatmul.bf16.vlgmr.msrb.gmra.mxu3 %v234_v63 }
 0x12e   :  { %v442_v42 = vpop.f32.mrf.mxu0 }
 0x12f   :  { %v455_v43 = vpop.f32.mrf.mxu1  ;;  %v443_v44 = vadd.f32 %v442_v42, %v269_v41 }
 0x131   :  { %v456_v45 = vadd.f32 %v455_v43, %v443_v44 }
 0x133   :  { %v485_v47 = vmax.f32 %v456_v45, 0.0 }
 0x134   :  { %v468_v49 = vpop.f32.mrf.mxu2 }
 0x135   :  { %v487_v48 = vpack.c.bf16 %v485_v47, %v485_v47  ;;  %v481_v50 = vpop.f32.mrf.mxu3  ;;  %v469_v51 = vadd.f32 %v468_v49, %v270_v46 }
 0x136   :  { %v444_v52 = vpop.f32.mrf.mxu0 }
 0x137   :  { %v457_v53 = vpop.f32.mrf.mxu1  ;;  %695 = vmatmul.bf16.vlgmr.msra.gmra.mxu0 %v487_v48  ;;  %721 = vmatmul.bf16.vlgmr.msra.gmra.mxu2 %v487_v48  ;;  %v482_v54 = vadd.f32 %v481_v50, %v469_v51 }
 0x139   :  { %v486_v55 = vmax.f32 %v482_v54, 0.0 }
 0x13b   :  { %v488_v56 = vpack.c.bf16 %v486_v55, %v486_v55 }
 0x13c   :  { %v470_v57 = vpop.f32.mrf.mxu2 }
 0x13d   :  { %v483_v58 = vpop.f32.mrf.mxu3  ;;  %708 = vmatmul.bf16.vlgmr.msra.gmra.mxu1 %v488_v56  ;;  %734 = vmatmul.bf16.vlgmr.msra.gmra.mxu3 %v488_v56 }
 0x1b4   :  { %v696_v60 = vpop.f32.mrf.mxu0 }
 0x1b5   :  { %v697_v62 = vadd.f32 %v696_v60, %v523_v61 }
 0x1ba   :  { %v722_v63 = vpop.f32.mrf.mxu2  ;;  %v709_v0 = vpop.f32.mrf.mxu1 }
 0x1bb   :  { %v710_v1 = vadd.f32 %v709_v0, %v697_v62  ;;  %v723_v6 = vadd.f32 %v722_v63, %v524_v2 }
 0x1bc   :  { %v698_v3 = vpop.f32.mrf.mxu0 }
 0x1bd   :  { %v739_v4 = vmax.f32 %v710_v1, 0.0 }
 0x1bf   :  { %v741_v5 = vpack.c.bf16 %v739_v4, %v739_v4 }
 0x1c0   :  { %v735_v7 = vpop.f32.mrf.mxu3 }
 0x1c1   :  { %v736_v8 = vadd.f32 %v735_v7, %v723_v6  ;;  %759 = vmatpush.bf16.xpose.msrb.mxu0 %v741_v5 }
 0x1c2   :  { %v724_v9 = vpop.f32.mrf.mxu2  ;;  %v711_v10 = vpop.f32.mrf.mxu1 }
 0x1c3   :  { %v740_v11 = vmax.f32 %v736_v8, 0.0 }
 0x1c5   :  { %v742_v12 = vpack.c.bf16 %v740_v11, %v740_v11 }
 0x1c7   :  { %772 = vmatpush.bf16.xpose.msrb.mxu1 %v742_v12 }
 0x1c8   :  { %v737_v14 = vpop.f32.mrf.mxu3  ;;  %760 = vmatmul.bf16.vlgmr.msrb.gmra.mxu0 %v748_v13 }
 0x1ce   :  { %773 = vmatmul.bf16.vlgmr.msrb.gmra.mxu1 %v749_v15 }
 0x245   :  { %v761_v17 = vpop.f32.mrf.mxu0 }
 0x246   :  { %v762_v18 = vadd.f32 %v761_v17, %v745_v16 }
 0x24b   :  { %v774_v19 = vpop.f32.mrf.mxu1 }
 0x24c   :  { %v775_v20 = vadd.f32 %v774_v19, %v762_v18 }
 0x24d   :  { %v763_v21 = vpop.f32.mrf.mxu0 }
 0x24e   :  { %779 = vst.msk [vmem:[#allocation14] sm:$0x1] %vm778_vm5, %v775_v20 }
 0x24f   :  { %790 = dma.vmem_to_hbm [thread:$0]  %s786_s30, 16, %s788_s14, [#allocation5]  }
 0x253   :  { %v776_v22 = vpop.f32.mrf.mxu1 }
 0x254   :  { %1320 = dma.done.wait [#allocation5], 16  }
 0x255   :  { %1321 = vsyncadd [#allocation5], 4294967280 }
 0x256   :  { %795 = vsyncpa [#allocation4], 1 }
 0x257   :  { %796 = vsyncpa [#allocation7], 1 }
 0x258   :  { %797 = vsyncpa [#allocation10], 1 }
 0x259   :  { %798 = vsyncpa [#allocation13], 1 }
 0x25a   :  { %799 = vsyncpa [#allocation5], 1 }

</bundles_post_ra>
